<compile_context>
chip_gen: v7x
topology: tpu7x:2x2x1
jax: 0.10.0
libtpu: 0.0.40
codegen_flags: <defaults>
</compile_context>

<pallas_src>
import functools

import jax
import jax.numpy as jnp
import numpy as np
from jax import lax
from jax.experimental import pallas as pl
from jax.experimental.pallas import tpu as pltpu


def _smoothing_kernel(x_ref, eps_ref, gum_ref, w_ref, b_ref,
                      sel_mb_ref, sel_bm_ref, o_ref,
                      base_tiled_ref, onehot_acc_ref,
                      *, consensus_thresh):
    """One grid step processes S_TILE Monte-Carlo samples (M = S_TILE*B rows).

    Shapes (Kp = K + 1, last class column is the padded 'abstain' slot):
      x_ref          (B, D)    bf16   resident
      eps_ref        (M, D)    bf16   streamed per sample-tile (eps1+eps2 combined)
      gum_ref        (M, Kp)   f32    streamed per sample-tile
      w_ref          (D, Kp)   bf16   resident (last column zero)
      b_ref          (1, Kp)   f32    resident (last entry -1e30)
      sel_mb_ref     (M, B)    f32    sel_mb[m, b] = 1 iff m % B == b
      sel_bm_ref     (B, M)    f32    transpose of sel_mb
      o_ref          (B, Kp)   f32
      base_tiled_ref (M, Kp)   f32 scratch  (x @ W + b, tiled to M rows)
      onehot_acc_ref (M, Kp)   f32 scratch  (per-row one-hot accumulator)
    """
    s = pl.program_id(0)

    @pl.when(s == 0)
    def _():
        onehot_acc_ref[...] = jnp.zeros_like(onehot_acc_ref)
        # Base logits for the clean input, computed once.
        base = (jnp.dot(x_ref[...], w_ref[...],
                        preferred_element_type=jnp.float32)
                + b_ref[...])                                          # (B, Kp)
        # Tile to the M = S_TILE*B Monte-Carlo rows without a cross-sublane
        # reshape: base_tiled[m] = base[m % B]  (tiny MXU matmul, once).
        base_tiled_ref[...] = jnp.dot(sel_mb_ref[...], base,
                                      preferred_element_type=jnp.float32)

    # Per-sample delta logits on the MXU, f32 accumulation.
    dlog = jnp.dot(eps_ref[...], w_ref[...],
                   preferred_element_type=jnp.float32)                 # (M, Kp)

    # gumbel_softmax(hard=True) forward value == one-hot of argmax(logits + g).
    z = dlog + base_tiled_ref[...] + gum_ref[...]                      # (M, Kp)
    m_rows, kp = z.shape
    col = lax.broadcasted_iota(jnp.int32, (m_rows, kp), 1)
    z_max = jnp.max(z, axis=1, keepdims=True)
    # First index achieving the max (matches torch argmax tie-breaking).
    first_idx = jnp.min(jnp.where(z >= z_max, col, kp), axis=1, keepdims=True)
    onehot_acc_ref[...] += (col == first_idx).astype(jnp.float32)      # (M, Kp)

    @pl.when(s == pl.num_programs(0) - 1)
    def _():
        # Fold per-row one-hot sums into per-batch-row vote counts, once:
        # votes[b, :] = sum_{m : m % B == b} onehot_acc[m, :]
        votes = jnp.dot(sel_bm_ref[...], onehot_acc_ref[...],
                        preferred_element_type=jnp.float32)            # (B, Kp)
        # abstain iff max vote count < n_samples * consensus_pc
        keep = jnp.max(votes, axis=1, keepdims=True) >= consensus_thresh
        colv = lax.broadcasted_iota(jnp.int32, votes.shape, 1)
        abstain = (colv == votes.shape[1] - 1).astype(jnp.float32)     # [0,..,0,1]
        o_ref[...] = jnp.where(keep, votes, abstain).astype(o_ref.dtype)


def _choose_s_tile(n_samples, batch, d, kp, budget_bytes=20 * 1024 * 1024):
    """Largest legal sample tile whose per-step VMEM estimate fits the budget."""
    legal = []
    for st in range(1, n_samples + 1):
        if n_samples % st:
            continue
        if st != n_samples and (st * batch) % 8 != 0:
            continue  # block rows must be a multiple of 8 or the full extent
        legal.append(st)
    fitting = []
    for st in legal:
        m = st * batch
        need = (2 * m * d * 2          # eps block, double-buffered, bf16
                + 2 * m * kp * 4       # gumbel block, double-buffered, f32
                + 2 * batch * d * 2    # resident x (bf16)
                + 2 * d * kp * 2       # resident W (bf16)
                + 2 * kp * 4           # bias
                + 2 * 2 * m * batch * 4  # selection matrices
                + 2 * m * kp * 4       # scratch (base_tiled + onehot_acc)
                + batch * kp * 4)      # output block
        if need <= budget_bytes:
            fitting.append(st)
    return max(fitting) if fitting else min(legal)


def gaussian_smoothing_forward(x, w, b, eps, gumbel,
                               *, n_samples, consensus_pc, s_tile=None):
    """x: (B, C, H, W); w: (D, K); b: (K,);
    eps: (n_samples, B, C, H, W) combined noise (eps1 + eps2 ~ N(0, sigma*sqrt(2)));
    gumbel: (n_samples, B, K).
    Returns (B, K+1) float32 (vote counts + abstain column)."""
    B = x.shape[0]
    D = int(np.prod(x.shape[1:]))
    K = w.shape[1]
    Kp = K + 1

    if s_tile is None:
        s_tile = _choose_s_tile(n_samples, B, D, Kp)
    assert n_samples % s_tile == 0
    M = s_tile * B
    num_tiles = n_samples // s_tile

    # bf16 operands for the streamed matmul; f32 only where it matters.
    x_f = x.reshape(B, D).astype(jnp.bfloat16)
    e = eps.reshape(n_samples * B, D).astype(jnp.bfloat16)

    # Pad the class axis to K+1: extra weight column 0, extra bias -1e30 so the
    # padded column never wins the argmax; the kernel then works entirely in
    # the (B, K+1) output domain and finishes with one full-tile store.
    w_p = jnp.pad(w.astype(jnp.bfloat16), ((0, 0), (0, 1)))
    b_p = jnp.concatenate(
        [b.reshape(1, K).astype(jnp.float32),
         jnp.full((1, 1), -1e30, jnp.float32)], axis=1)
    gum_p = jnp.pad(gumbel.reshape(n_samples * B, K).astype(jnp.float32),
                    ((0, 0), (0, 1)))

    # Tiny constant selection matrices (row m of a sample tile belongs to
    # batch element m % B).  Passed as resident inputs.
    m_idx = np.arange(M)
    sel_np = (m_idx[:, None] % B) == np.arange(B)[None, :]
    sel_mb = jnp.asarray(sel_np, dtype=jnp.float32)        # (M, B)
    sel_bm = jnp.asarray(sel_np.T, dtype=jnp.float32)      # (B, M)

    kernel = functools.partial(
        _smoothing_kernel,
        consensus_thresh=float(n_samples * consensus_pc))

    return pl.pallas_call(
        kernel,
        out_shape=jax.ShapeDtypeStruct((B, Kp), jnp.float32),
        grid_spec=pltpu.PrefetchScalarGridSpec(
            num_scalar_prefetch=0,
            grid=(num_tiles,),
            in_specs=[
                pl.BlockSpec((B, D), lambda s: (0, 0)),     # x (resident)
                pl.BlockSpec((M, D), lambda s: (s, 0)),     # eps sample tile
                pl.BlockSpec((M, Kp), lambda s: (s, 0)),    # gumbel sample tile
                pl.BlockSpec((D, Kp), lambda s: (0, 0)),    # W (resident)
                pl.BlockSpec((1, Kp), lambda s: (0, 0)),    # bias
                pl.BlockSpec((M, B), lambda s: (0, 0)),     # sel_mb
                pl.BlockSpec((B, M), lambda s: (0, 0)),     # sel_bm
            ],
            out_specs=pl.BlockSpec((B, Kp), lambda s: (0, 0)),
            scratch_shapes=[pltpu.VMEM((M, Kp), jnp.float32),   # base tiled
                            pltpu.VMEM((M, Kp), jnp.float32)],  # one-hot accum
        ),
        compiler_params=pltpu.CompilerParams(
            dimension_semantics=("arbitrary",),
            vmem_limit_bytes=32 * 1024 * 1024),
    )(x_f, e, gum_p, w_p, b_p, sel_mb, sel_bm)


if __name__ == "__main__":
    # Small deterministic configuration.
    B, C, H, W = 2, 4, 16, 16
    K = 10                     # number of classes of the wrapped classifier
    n_samples = 8
    sigma = 0.1
    consensus_pc = 0.5
    D = C * H * W

    key = jax.random.PRNGKey(0)
    k_x, k_w, k_b, k_e, k_g = jax.random.split(key, 5)

    x = jax.random.normal(k_x, (B, C, H, W), dtype=jnp.float32)

    # Deterministic "model" parameters (simple linear classifier).
    w_cls = jax.random.normal(k_w, (D, K), dtype=jnp.float32) * 0.05
    b_cls = jax.random.normal(k_b, (K,), dtype=jnp.float32) * 0.01

    # The module applies two independent N(0, sigma) perturbations (forward()
    # eps + perturb() eps); their sum is exactly N(0, sigma*sqrt(2)), so a
    # single draw at the combined std is statistically identical and halves
    # the bytes the kernel has to stream.
    sigma_eff = sigma * float(np.sqrt(2.0))
    eps = sigma_eff * jax.random.normal(
        k_e, (n_samples, B, C, H, W), jnp.bfloat16)

    # Gumbel noise used by gumbel_softmax (tau=1, hard=True).
    gumbel = jax.random.gumbel(k_g, (n_samples, B, K), dtype=jnp.float32)

    out = gaussian_smoothing_forward(
        x, w_cls, b_cls, eps, gumbel,
        n_samples=n_samples, consensus_pc=consensus_pc)
    out = jax.block_until_ready(out)

    # Invariant checks: each row is either the vote counts (summing to
    # n_samples, abstain column 0) or the abstain one-hot [0, ..., 0, 1].
    out_np = np.asarray(out)
    assert out_np.shape == (B, K + 1)
    for row in out_np:
        if row[-1] == 1.0 and row[:-1].sum() == 0.0:
            continue  # abstain row
        assert row[-1] == 0.0 and row[:-1].sum() == n_samples, row

    print("KERNEL_OK")
</pallas_src>

<mosaic_0001>
module attributes {stable_mosaic.version = 11 : i64} {
  func.func @_smoothing_kernel(%arg0: i32, %arg1: memref<2x1024xbf16, #tpu.memory_space<vmem>>, %arg2: memref<16x1024xbf16, #tpu.memory_space<vmem>>, %arg3: memref<16x11xf32, #tpu.memory_space<vmem>>, %arg4: memref<1024x11xbf16, #tpu.memory_space<vmem>>, %arg5: memref<1x11xf32, #tpu.memory_space<vmem>>, %arg6: memref<16x2xf32, #tpu.memory_space<vmem>>, %arg7: memref<2x16xf32, #tpu.memory_space<vmem>>, %arg8: memref<2x11xf32, #tpu.memory_space<vmem>>, %arg9: memref<16x11xf32, #tpu.memory_space<vmem>>, %arg10: memref<16x11xf32, #tpu.memory_space<vmem>>) attributes {dimension_semantics = [#tpu.dimension_semantics<arbitrary>], iteration_bounds = array<i64: 1>, scalar_prefetch = 0 : i64, scratch_operands = 2 : i64, tpu.core_type = #tpu.core_type<tc>, window_params = [{pipeline_mode = #tpu.pipeline_mode<synchronous>, transform_indices = @transform_0, window_bounds = array<i64: 2, 1024>}, {transform_indices = @transform_1, window_bounds = array<i64: 16, 1024>}, {transform_indices = @transform_2, window_bounds = array<i64: 16, 11>}, {pipeline_mode = #tpu.pipeline_mode<synchronous>, transform_indices = @transform_3, window_bounds = array<i64: 1024, 11>}, {pipeline_mode = #tpu.pipeline_mode<synchronous>, transform_indices = @transform_4, window_bounds = array<i64: 1, 11>}, {pipeline_mode = #tpu.pipeline_mode<synchronous>, transform_indices = @transform_5, window_bounds = array<i64: 16, 2>}, {pipeline_mode = #tpu.pipeline_mode<synchronous>, transform_indices = @transform_6, window_bounds = array<i64: 2, 16>}, {pipeline_mode = #tpu.pipeline_mode<synchronous>, transform_indices = @transform_7, window_bounds = array<i64: 2, 11>}]} {
    %c0_i32 = arith.constant 0 : i32
    %0 = arith.cmpi eq, %arg0, %c0_i32 : i32
    %1 = arith.extui %0 : i1 to i32
    %c0_i32_0 = arith.constant 0 : i32
    %2 = arith.cmpi ne, %1, %c0_i32_0 : i32
    scf.if %2 {
      %cst_16 = arith.constant 0.000000e+00 : f32
      %29 = vector.broadcast %cst_16 : f32 to vector<16x11xf32>
      %c0_17 = arith.constant 0 : index
      %c0_18 = arith.constant 0 : index
      %30 = vector.load %arg10[%c0_17, %c0_18] : memref<16x11xf32, #tpu.memory_space<vmem>>, vector<16x11xf32>
      tpu.vector_store %arg10[%c0_17, %c0_18], %29 {strides = array<i32>} : memref<16x11xf32, #tpu.memory_space<vmem>>, vector<16x11xf32>,
      %c0_19 = arith.constant 0 : index
      %c0_20 = arith.constant 0 : index
      %31 = vector.load %arg1[%c0_19, %c0_20] : memref<2x1024xbf16, #tpu.memory_space<vmem>>, vector<2x1024xbf16>
      %c0_21 = arith.constant 0 : index
      %c0_22 = arith.constant 0 : index
      %32 = vector.load %arg4[%c0_21, %c0_22] : memref<1024x11xbf16, #tpu.memory_space<vmem>>, vector<1024x11xbf16>
      %cst_23 = arith.constant dense<0.000000e+00> : vector<2x11xf32>
      %33 = tpu.matmul %31, %32, %cst_23 {dimension_numbers = #tpu.dot_dimension_numbers<[1], [0], [0], [1], [0, 0, 1, 1], [], []>} : vector<2x1024xbf16>, vector<1024x11xbf16>, vector<2x11xf32> -> vector<2x11xf32>
      %c0_24 = arith.constant 0 : index
      %c0_25 = arith.constant 0 : index
      %34 = vector.load %arg5[%c0_24, %c0_25] : memref<1x11xf32, #tpu.memory_space<vmem>>, vector<1x11xf32>
      %35 = vector.broadcast %34 : vector<1x11xf32> to vector<2x11xf32>
      %36 = arith.addf %33, %35 : vector<2x11xf32>
      %c0_26 = arith.constant 0 : index
      %c0_27 = arith.constant 0 : index
      %37 = vector.load %arg6[%c0_26, %c0_27] : memref<16x2xf32, #tpu.memory_space<vmem>>, vector<16x2xf32>
      %cst_28 = arith.constant dense<0.000000e+00> : vector<16x11xf32>
      %38 = tpu.matmul %37, %36, %cst_28 {dimension_numbers = #tpu.dot_dimension_numbers<[1], [0], [0], [1], [0, 0, 1, 1], [], []>} : vector<16x2xf32>, vector<2x11xf32>, vector<16x11xf32> -> vector<16x11xf32>
      %c0_29 = arith.constant 0 : index
      %c0_30 = arith.constant 0 : index
      %39 = vector.load %arg9[%c0_29, %c0_30] : memref<16x11xf32, #tpu.memory_space<vmem>>, vector<16x11xf32>
      tpu.vector_store %arg9[%c0_29, %c0_30], %38 {strides = array<i32>} : memref<16x11xf32, #tpu.memory_space<vmem>>, vector<16x11xf32>,
    } else {
    }
    %c0 = arith.constant 0 : index
    %c0_1 = arith.constant 0 : index
    %3 = vector.load %arg2[%c0, %c0_1] : memref<16x1024xbf16, #tpu.memory_space<vmem>>, vector<16x1024xbf16>
    %c0_2 = arith.constant 0 : index
    %c0_3 = arith.constant 0 : index
    %4 = vector.load %arg4[%c0_2, %c0_3] : memref<1024x11xbf16, #tpu.memory_space<vmem>>, vector<1024x11xbf16>
    %cst = arith.constant dense<0.000000e+00> : vector<16x11xf32>
    %5 = tpu.matmul %3, %4, %cst {dimension_numbers = #tpu.dot_dimension_numbers<[1], [0], [0], [1], [0, 0, 1, 1], [], []>} : vector<16x1024xbf16>, vector<1024x11xbf16>, vector<16x11xf32> -> vector<16x11xf32>
    %c0_4 = arith.constant 0 : index
    %c0_5 = arith.constant 0 : index
    %6 = vector.load %arg9[%c0_4, %c0_5] : memref<16x11xf32, #tpu.memory_space<vmem>>, vector<16x11xf32>
    %7 = arith.addf %5, %6 : vector<16x11xf32>
    %c0_6 = arith.constant 0 : index
    %c0_7 = arith.constant 0 : index
    %8 = vector.load %arg3[%c0_6, %c0_7] : memref<16x11xf32, #tpu.memory_space<vmem>>, vector<16x11xf32>
    %9 = arith.addf %7, %8 : vector<16x11xf32>
    %10 = tpu.iota {dimensions = array<i32: 1>} : vector<16x11xi32>
    %cst_8 = arith.constant dense<0xFF800000> : vector<16xf32>
    %11 = vector.multi_reduction <maximumf>, %9, %cst_8 [1] : vector<16x11xf32> to vector<16xf32>
    %12 = vector.shape_cast %11 : vector<16xf32> to vector<16x1xf32>
    %13 = vector.broadcast %12 : vector<16x1xf32> to vector<16x11xf32>
    %14 = arith.cmpf oge, %9, %13 : vector<16x11xf32>
    %c11_i32 = arith.constant 11 : i32
    %15 = vector.broadcast %c11_i32 : i32 to vector<16x11xi32>
    %16 = arith.select %14, %10, %15 : vector<16x11xi1>, vector<16x11xi32>
    %cst_9 = arith.constant dense<2147483647> : vector<16xi32>
    %17 = vector.multi_reduction <minsi>, %16, %cst_9 [1] : vector<16x11xi32> to vector<16xi32>
    %18 = vector.shape_cast %17 : vector<16xi32> to vector<16x1xi32>
    %c0_10 = arith.constant 0 : index
    %c0_11 = arith.constant 0 : index
    %19 = vector.load %arg10[%c0_10, %c0_11] : memref<16x11xf32, #tpu.memory_space<vmem>>, vector<16x11xf32>
    %20 = vector.broadcast %18 : vector<16x1xi32> to vector<16x11xi32>
    %21 = arith.cmpi eq, %10, %20 : vector<16x11xi32>
    %22 = arith.extui %21 : vector<16x11xi1> to vector<16x11xi32>
    %23 = arith.sitofp %22 : vector<16x11xi32> to vector<16x11xf32>
    %24 = arith.addf %19, %23 : vector<16x11xf32>
    %c0_12 = arith.constant 0 : index
    %c0_13 = arith.constant 0 : index
    %25 = vector.load %arg10[%c0_12, %c0_13] : memref<16x11xf32, #tpu.memory_space<vmem>>, vector<16x11xf32>
    tpu.vector_store %arg10[%c0_12, %c0_13], %24 {strides = array<i32>} : memref<16x11xf32, #tpu.memory_space<vmem>>, vector<16x11xf32>,
    %c0_i32_14 = arith.constant 0 : i32
    %26 = arith.cmpi eq, %arg0, %c0_i32_14 : i32
    %27 = arith.extui %26 : i1 to i32
    %c0_i32_15 = arith.constant 0 : i32
    %28 = arith.cmpi ne, %27, %c0_i32_15 : i32
    scf.if %28 {
      %c0_16 = arith.constant 0 : index
      %c0_17 = arith.constant 0 : index
      %29 = vector.load %arg7[%c0_16, %c0_17] : memref<2x16xf32, #tpu.memory_space<vmem>>, vector<2x16xf32>
      %c0_18 = arith.constant 0 : index
      %c0_19 = arith.constant 0 : index
      %30 = vector.load %arg10[%c0_18, %c0_19] : memref<16x11xf32, #tpu.memory_space<vmem>>, vector<16x11xf32>
      %cst_20 = arith.constant dense<0.000000e+00> : vector<2x11xf32>
      %31 = tpu.matmul %29, %30, %cst_20 {dimension_numbers = #tpu.dot_dimension_numbers<[1], [0], [0], [1], [0, 0, 1, 1], [], []>} : vector<2x16xf32>, vector<16x11xf32>, vector<2x11xf32> -> vector<2x11xf32>
      %cst_21 = arith.constant dense<0xFF800000> : vector<2xf32>
      %32 = vector.multi_reduction <maximumf>, %31, %cst_21 [1] : vector<2x11xf32> to vector<2xf32>
      %33 = vector.shape_cast %32 : vector<2xf32> to vector<2x1xf32>
      %cst_22 = arith.constant 4.000000e+00 : f32
      %34 = vector.broadcast %cst_22 : f32 to vector<2x1xf32>
      %35 = arith.cmpf oge, %33, %34 : vector<2x1xf32>
      %36 = tpu.iota {dimensions = array<i32: 1>} : vector<2x11xi32>
      %c10_i32 = arith.constant 10 : i32
      %37 = vector.broadcast %c10_i32 : i32 to vector<2x11xi32>
      %38 = arith.cmpi eq, %36, %37 : vector<2x11xi32>
      %39 = arith.extui %38 : vector<2x11xi1> to vector<2x11xi32>
      %40 = arith.sitofp %39 : vector<2x11xi32> to vector<2x11xf32>
      %41 = vector.shape_cast %35 : vector<2x1xi1> to vector<2x1xi1>
      %42 = vector.broadcast %41 : vector<2x1xi1> to vector<2x11xi1>
      %43 = arith.select %42, %31, %40 : vector<2x11xi1>, vector<2x11xf32>
      %c0_23 = arith.constant 0 : index
      %c0_24 = arith.constant 0 : index
      %44 = vector.load %arg8[%c0_23, %c0_24] : memref<2x11xf32, #tpu.memory_space<vmem>>, vector<2x11xf32>
      tpu.vector_store %arg8[%c0_23, %c0_24], %43 {strides = array<i32>} : memref<2x11xf32, #tpu.memory_space<vmem>>, vector<2x11xf32>,
    } else {
    }
    return
  }
  func.func @transform_0(%arg0: i32) -> (i32, i32) {
    %c0_i32 = arith.constant 0 : i32
    %c0_i32_0 = arith.constant 0 : i32
    %c0_i32_1 = arith.constant 0 : i32
    return %c0_i32, %c0_i32_0 : i32, i32
  }
  func.func @transform_1(%arg0: i32) -> (i32, i32) {
    %c0_i32 = arith.constant 0 : i32
    %c0_i32_0 = arith.constant 0 : i32
    return %arg0, %c0_i32 : i32, i32
  }
  func.func @transform_2(%arg0: i32) -> (i32, i32) {
    %c0_i32 = arith.constant 0 : i32
    %c0_i32_0 = arith.constant 0 : i32
    return %arg0, %c0_i32 : i32, i32
  }
  func.func @transform_3(%arg0: i32) -> (i32, i32) {
    %c0_i32 = arith.constant 0 : i32
    %c0_i32_0 = arith.constant 0 : i32
    %c0_i32_1 = arith.constant 0 : i32
    return %c0_i32, %c0_i32_0 : i32, i32
  }
  func.func @transform_4(%arg0: i32) -> (i32, i32) {
    %c0_i32 = arith.constant 0 : i32
    %c0_i32_0 = arith.constant 0 : i32
    %c0_i32_1 = arith.constant 0 : i32
    return %c0_i32, %c0_i32_0 : i32, i32
  }
  func.func @transform_5(%arg0: i32) -> (i32, i32) {
    %c0_i32 = arith.constant 0 : i32
    %c0_i32_0 = arith.constant 0 : i32
    %c0_i32_1 = arith.constant 0 : i32
    return %c0_i32, %c0_i32_0 : i32, i32
  }
  func.func @transform_6(%arg0: i32) -> (i32, i32) {
    %c0_i32 = arith.constant 0 : i32
    %c0_i32_0 = arith.constant 0 : i32
    %c0_i32_1 = arith.constant 0 : i32
    return %c0_i32, %c0_i32_0 : i32, i32
  }
  func.func @transform_7(%arg0: i32) -> (i32, i32) {
    %c0_i32 = arith.constant 0 : i32
    %c0_i32_0 = arith.constant 0 : i32
    %c0_i32_1 = arith.constant 0 : i32
    return %c0_i32, %c0_i32_0 : i32, i32
  }
}

</mosaic_0001>

<bundles_post_ra>
// kernel: tpu_custom_call.1
= control target key start
LH: loop header
LB: loop body
LE: loop exit
PB: predicated region body
PF: predicated region fallthrough
CT: control target
= control target key end

     0   :  { %v176_v28 = vlaneseq  ;;  %v2253_v36 = vmov 1966171168   ;;  %s2773_s0 = inlined_call_operand.vmem [shape: bf16[2,1024], index: 0, kind: input, shape index: {}]   ;;  %s2774_s1 = inlined_call_operand.vmem [shape: bf16[16,1024], index: 1, kind: input, shape index: {}]   ;;  %s2775_s2 = inlined_call_operand.vmem [shape: f32[16,11], index: 2, kind: input, shape index: {}]   ;;  %s2776_s3 = inlined_call_operand.vmem [shape: bf16[1024,11], index: 3, kind: input, shape index: {}]   ;;  %s2777_s4 = inlined_call_operand.vmem [shape: f32[1,11], index: 4, kind: input, shape index: {}]   ;;  %s2778_s5 = inlined_call_operand.vmem [shape: f32[16,2], index: 5, kind: input, shape index: {}]   ;;  %s2779_s6 = inlined_call_operand.vmem [shape: f32[2,16], index: 6, kind: input, shape index: {}]   ;;  %s2780_s7 = inlined_call_operand.hbm [shape: f32[2,11], index: 7, kind: output, shape index: {}]  }
   0x1   :  { %v2100_v0 = vld [vmem:[%s2776_s3 + $0x40] sm:$0xff]   ;;  %v2104_v4 = vld [vmem:[%s2776_s3 + $0x48] sm:$0xff]   ;;  %v2108_v8 = vld [vmem:[%s2776_s3 + $0x50] sm:$0xff]   ;;  %v174_v37 = vunpack.c.l.s4 %v2253_v36 }
   0x2   :  { %v2101_v1 = vld [vmem:[%s2776_s3 + $0xc0] sm:$0xff]   ;;  %1898 = vmatprep.subr.bf16.mxu0 %v2100_v0  ;;  %v2105_v5 = vld [vmem:[%s2776_s3 + $0xc8] sm:$0xff]   ;;  %v2109_v9 = vld [vmem:[%s2776_s3 + $0xd0] sm:$0xff]   ;;  %v177_v33 = vshrl.u32 %v176_v28, 7 }
   0x3   :  { %v2102_v2 = vld [vmem:[%s2776_s3] sm:$0xff]   ;;  %1920 = vmatprep.subr.bf16.mxu1 %v2101_v1  ;;  %v2106_v6 = vld [vmem:[%s2776_s3 + $0x8] sm:$0xff]   ;;  %v2110_v10 = vld [vmem:[%s2776_s3 + $0x10] sm:$0xff]   ;;  %v175_v40 = vunpack.c.0.s8 %v174_v37 }
   0x4   :  { %v2103_v3 = vld [vmem:[%s2776_s3 + $0x80] sm:$0xff]   ;;  %1899 = vmatpush3.bf16.msra.mxu0 %v2102_v2  ;;  %v2107_v7 = vld [vmem:[%s2776_s3 + $0x88] sm:$0xff]   ;;  %v2111_v11 = vld [vmem:[%s2776_s3 + $0x90] sm:$0xff]  }
   0x5   :  { %1921 = vmatpush3.bf16.msra.mxu1 %v2103_v3  ;;  %1900 = vmatprep.subr.bf16.mxu0 %v2104_v4  ;;  %v2112_v12 = vld [vmem:[%s2776_s3 + $0x58] sm:$0xff]   ;;  %v2116_v16 = vld [vmem:[%s2776_s3 + $0x60] sm:$0xff]   ;;  %v2120_v20 = vld [vmem:[%s2776_s3 + $0x68] sm:$0xff]   ;;  %v2404_v41 = vsub.s32 %v175_v40, %v177_v33 }
   0x6   :  { %1922 = vmatprep.subr.bf16.mxu1 %v2105_v5  ;;  %v2113_v13 = vld [vmem:[%s2776_s3 + $0xd8] sm:$0xff]   ;;  %v2117_v17 = vld [vmem:[%s2776_s3 + $0xe0] sm:$0xff]   ;;  %v2121_v21 = vld [vmem:[%s2776_s3 + $0xe8] sm:$0xff]  }
   0x7   :  { %v2114_v14 = vld [vmem:[%s2776_s3 + $0x18] sm:$0xff]   ;;  %v2118_v18 = vld [vmem:[%s2776_s3 + $0x20] sm:$0xff]   ;;  %v2122_v22 = vld [vmem:[%s2776_s3 + $0x28] sm:$0xff]  }
   0x8   :  { %1901 = vmatpush3.bf16.msra.mxu0 %v2106_v6  ;;  %v2115_v15 = vld [vmem:[%s2776_s3 + $0x98] sm:$0xff]   ;;  %v2119_v19 = vld [vmem:[%s2776_s3 + $0xa0] sm:$0xff]   ;;  %v2123_v23 = vld [vmem:[%s2776_s3 + $0xa8] sm:$0xff]  }
   0x9   :  { %1923 = vmatpush3.bf16.msra.mxu1 %v2107_v7  ;;  %1902 = vmatprep.subr.bf16.mxu0 %v2108_v8  ;;  %v2124_v24 = vld [vmem:[%s2776_s3 + $0x70] sm:$0xff]   ;;  %v2128_v29 = vld [vmem:[%s2776_s3 + $0x78] sm:$0xff]   ;;  %v35_v34 = vld [vmem:[%s2773_s0] sm:$0xff] }
   0xa   :  { %1924 = vmatprep.subr.bf16.mxu1 %v2109_v9  ;;  %v2125_v25 = vld [vmem:[%s2776_s3 + $0xf0] sm:$0xff]   ;;  %v2129_v30 = vld [vmem:[%s2776_s3 + $0xf8] sm:$0xff]   ;;  %v2133_v35 = vld [vmem:[%s2776_s3 + $0x140] sm:$0xff]   ;;  %v172_v39 = vcombine.high %v35_v34, %v35_v34  ;;  %v179_v42 = vrot.slane %v35_v34, %v2404_v41 }
   0xb   :  { %v2126_v26 = vld [vmem:[%s2776_s3 + $0x30] sm:$0xff]   ;;  %v2130_v31 = vld [vmem:[%s2776_s3 + $0x38] sm:$0xff]   ;;  %v2134_v38 = vld [vmem:[%s2776_s3 + $0x1c0] sm:$0xff]  }
   0xc   :  { %1903 = vmatpush3.bf16.msra.mxu0 %v2110_v10  ;;  %v2127_v27 = vld [vmem:[%s2776_s3 + $0xb0] sm:$0xff]   ;;  %v2131_v32 = vld [vmem:[%s2776_s3 + $0xb8] sm:$0xff]   ;;  %v2408_v43 = vrot.slane %v172_v39, %v2404_v41  ;;  %v187_v44 = vcombine.high %v179_v42, %v179_v42  ;;  %v195_v45 = vrot.slane %v179_v42, %v2404_v41  ;;  %v2135_v47 = vld [vmem:[%s2776_s3 + $0x100] sm:$0xff]  }
   0xd   :  { %1925 = vmatpush3.bf16.msra.mxu1 %v2111_v11  ;;  %1904 = vmatprep.subr.bf16.mxu0 %v2112_v12  ;;  %v2136_v49 = vld [vmem:[%s2776_s3 + $0x180] sm:$0xff]   ;;  %v2137_v52 = vld [vmem:[%s2776_s3 + $0x148] sm:$0xff]   ;;  %v2141_v58 = vld [vmem:[%s2776_s3 + $0x150] sm:$0xff]  }
   0xe   :  { %1926 = vmatprep.subr.bf16.mxu1 %v2113_v13  ;;  %v188_v46 = vcombine.high %v2408_v43, %v2408_v43  ;;  %v209_v48 = vrot.slane %v187_v44, %v2404_v41  ;;  %v217_v51 = vcombine.high %v195_v45, %v195_v45  ;;  %v2138_v54 = vld [vmem:[%s2776_s3 + $0x1c8] sm:$0xff]   ;;  %v2142_v59 = vld [vmem:[%s2776_s3 + $0x1d0] sm:$0xff]   ;;  %v2145_v62 = vld [vmem:[%s2776_s3 + $0x158] sm:$0xff]  }
   0xf   :  { %v2139_v55 = vld [vmem:[%s2776_s3 + $0x108] sm:$0xff]   ;;  %v2143_v60 = vld [vmem:[%s2776_s3 + $0x110] sm:$0xff]   ;;  %v2146_v63 = vld [vmem:[%s2776_s3 + $0x1d8] sm:$0xff]  }
  0x10   :  { %1905 = vmatpush3.bf16.msra.mxu0 %v2114_v14  ;;  %v216_v50 = vrot.slane %v188_v46, %v2404_v41  ;;  %645 = vmatprep.mubr.bf16.mxu0 %v209_v48  ;;  %v219_v53 = vcombine.high %v209_v48, %v209_v48  ;;  %v2140_v57 = vld [vmem:[%s2776_s3 + $0x188] sm:$0xff]   ;;  %v2144_v61 = vld [vmem:[%s2776_s3 + $0x190] sm:$0xff]   ;;  %v2147_v0 = vld [vmem:[%s2776_s3 + $0x118] sm:$0xff]  }
  0x11   :  { %1927 = vmatpush3.bf16.msra.mxu1 %v2115_v15  ;;  %1906 = vmatprep.subr.bf16.mxu0 %v2116_v16  ;;  %v2148_v1 = vld [vmem:[%s2776_s3 + $0x198] sm:$0xff]   ;;  %v2149_v2 = vld [vmem:[%s2776_s3 + $0x160] sm:$0xff]   ;;  %v2153_v6 = vld [vmem:[%s2776_s3 + $0x168] sm:$0xff]  }
  0x12   :  { %1928 = vmatprep.subr.bf16.mxu1 %v2117_v17  ;;  %v220_v56 = vcombine.high %v216_v50, %v216_v50  ;;  %685 = vmatprep.mubr.bf16.mxu1 %v219_v53  ;;  %v2150_v3 = vld [vmem:[%s2776_s3 + $0x1e0] sm:$0xff]   ;;  %v2154_v7 = vld [vmem:[%s2776_s3 + $0x1e8] sm:$0xff]   ;;  %v2157_v10 = vld [vmem:[%s2776_s3 + $0x170] sm:$0xff]  }
  0x13   :  { %v2151_v4 = vld [vmem:[%s2776_s3 + $0x120] sm:$0xff]   ;;  %v2155_v8 = vld [vmem:[%s2776_s3 + $0x128] sm:$0xff]   ;;  %v2158_v11 = vld [vmem:[%s2776_s3 + $0x1f0] sm:$0xff]  }
  0x14   :  { %1907 = vmatpush3.bf16.msra.mxu0 %v2118_v18  ;;  %v2152_v5 = vld [vmem:[%s2776_s3 + $0x1a0] sm:$0xff]   ;;  %v2156_v9 = vld [vmem:[%s2776_s3 + $0x1a8] sm:$0xff]   ;;  %v2159_v12 = vld [vmem:[%s2776_s3 + $0x130] sm:$0xff]   ;;  %v202_v18 = vrot.slane %v2408_v43, %v2404_v41 }
  0x15   :  { %1929 = vmatpush3.bf16.msra.mxu1 %v2119_v19  ;;  %1908 = vmatprep.subr.bf16.mxu0 %v2120_v20  ;;  %v2161_v13 = vld [vmem:[%s2776_s3 + $0x178] sm:$0xff]   ;;  %v2160_v14 = vld [vmem:[%s2776_s3 + $0x1b0] sm:$0xff]  }
  0x16   :  { %1930 = vmatprep.subr.bf16.mxu1 %v2121_v21  ;;  %v2162_v15 = vld [vmem:[%s2776_s3 + $0x1f8] sm:$0xff]   ;;  %v218_v19 = vcombine.high %v202_v18, %v202_v18 }
  0x17   :  { %v2163_v16 = vld [vmem:[%s2776_s3 + $0x138] sm:$0xff]  }
  0x18   :  { %1909 = vmatpush3.bf16.msra.mxu0 %v2122_v22  ;;  %v2164_v17 = vld [vmem:[%s2776_s3 + $0x1b8] sm:$0xff]  }
  0x19   :  { %1931 = vmatpush3.bf16.msra.mxu1 %v2123_v23  ;;  %1910 = vmatprep.subr.bf16.mxu0 %v2124_v24 }
  0x1a   :  { %1932 = vmatprep.subr.bf16.mxu1 %v2125_v25 }
  0x1c   :  { %1911 = vmatpush3.bf16.msra.mxu0 %v2126_v26 }
  0x1d   :  { %1933 = vmatpush3.bf16.msra.mxu1 %v2127_v27  ;;  %1912 = vmatprep.subr.bf16.mxu0 %v2128_v29 }
  0x1e   :  { %1934 = vmatprep.subr.bf16.mxu1 %v2129_v30 }
  0x20   :  { %1913 = vmatpush3.bf16.msra.mxu0 %v2130_v31 }
  0x21   :  { %1935 = vmatpush3.bf16.msra.mxu1 %v2131_v32  ;;  %1942 = vmatprep.subr.bf16.mxu0 %v2133_v35 }
  0x22   :  { %1964 = vmatprep.subr.bf16.mxu1 %v2134_v38 }
  0x23   :  { %646 = vmatmul.mubr.bf16.vlgmr.msra.gmra.mrb[0].mxu0 %v195_v45 }
  0x24   :  { %1943 = vmatpush3.bf16.msra.mxu0 %v2135_v47  ;;  %686 = vmatmul.mubr.bf16.vlgmr.msra.gmra.mrb[0].mxu1 %v217_v51 }
  0x25   :  { %1944 = vmatprep.subr.bf16.mxu0 %v2137_v52  ;;  %1965 = vmatpush3.bf16.msra.mxu1 %v2136_v49 }
  0x26   :  { %725 = vmatprep.mubr.bf16.mxu0 %v216_v50  ;;  %1966 = vmatprep.subr.bf16.mxu1 %v2138_v54 }
  0x27   :  { %765 = vmatprep.mubr.bf16.mxu1 %v220_v56 }
  0x28   :  { %1945 = vmatpush3.bf16.msra.mxu0 %v2139_v55 }
  0x29   :  { %1946 = vmatprep.subr.bf16.mxu0 %v2141_v58  ;;  %1967 = vmatpush3.bf16.msra.mxu1 %v2140_v57 }
  0x2a   :  { %1968 = vmatprep.subr.bf16.mxu1 %v2142_v59 }
  0x2c   :  { %1947 = vmatpush3.bf16.msra.mxu0 %v2143_v60 }
  0x2d   :  { %1948 = vmatprep.subr.bf16.mxu0 %v2145_v62  ;;  %1969 = vmatpush3.bf16.msra.mxu1 %v2144_v61 }
  0x2e   :  { %1970 = vmatprep.subr.bf16.mxu1 %v2146_v63 }
  0x30   :  { %1949 = vmatpush3.bf16.msra.mxu0 %v2147_v0 }
  0x31   :  { %1950 = vmatprep.subr.bf16.mxu0 %v2149_v2  ;;  %1971 = vmatpush3.bf16.msra.mxu1 %v2148_v1 }
  0x32   :  { %1972 = vmatprep.subr.bf16.mxu1 %v2150_v3 }
  0x34   :  { %1951 = vmatpush3.bf16.msra.mxu0 %v2151_v4 }
  0x35   :  { %1952 = vmatprep.subr.bf16.mxu0 %v2153_v6  ;;  %1973 = vmatpush3.bf16.msra.mxu1 %v2152_v5 }
  0x36   :  { %1974 = vmatprep.subr.bf16.mxu1 %v2154_v7 }
  0x38   :  { %1953 = vmatpush3.bf16.msra.mxu0 %v2155_v8 }
  0x39   :  { %1954 = vmatprep.subr.bf16.mxu0 %v2157_v10  ;;  %1975 = vmatpush3.bf16.msra.mxu1 %v2156_v9 }
  0x3a   :  { %1976 = vmatprep.subr.bf16.mxu1 %v2158_v11 }
  0x3c   :  { %1955 = vmatpush3.bf16.msra.mxu0 %v2159_v12 }
  0x3d   :  { %1956 = vmatprep.subr.bf16.mxu0 %v2161_v13  ;;  %1977 = vmatpush3.bf16.msra.mxu1 %v2160_v14 }
  0x3e   :  { %1978 = vmatprep.subr.bf16.mxu1 %v2162_v15 }
  0x40   :  { %1957 = vmatpush3.bf16.msra.mxu0 %v2163_v16 }
  0x41   :  { %1979 = vmatpush3.bf16.msra.mxu1 %v2164_v17 }
  0x43   :  { %726 = vmatmul.mubr.bf16.vlgmr.msra.gmra.mrb[4].mxu0 %v202_v18 }
  0x44   :  { %766 = vmatmul.mubr.bf16.vlgmr.msra.gmra.mrb[4].mxu1 %v218_v19 }
  0x45   :  { %12 = vsyncpa [#allocation5], 0  ;;  %v2165_v20 = vld [vmem:[%s2776_s3 + $0x40] sm:$0xff]   ;;  %v2167_v22 = vld [vmem:[%s2776_s3 + $0x48] sm:$0xff]   ;;  %vm775_vm0 = vcmask 15360   ;;  %vm782_vm1 = vcmask 1041408  }
  0x46   :  { %v2166_v21 = vld [vmem:[%s2776_s3] sm:$0xff]   ;;  %1989 = vmatprep.subr.bf16.mxu1 %v2165_v20  ;;  %v2168_v23 = vld [vmem:[%s2776_s3 + $0x8] sm:$0xff]   ;;  %v2169_v24 = vld [vmem:[%s2776_s3 + $0x50] sm:$0xff]   ;;  %vm32_vm2 = vcmask 89088   ;;  %vm2256_vm7 = vmmov 0   ;;  %vm1654_vm10 = vcmask 130048  }
  0x47   :  { %1990 = vmatpush3.bf16.msra.mxu1 %v2166_v21  ;;  %v2170_v25 = vld [vmem:[%s2776_s3 + $0x10] sm:$0xff]   ;;  %v2171_v26 = vld [vmem:[%s2776_s3 + $0x58] sm:$0xff]   ;;  %v2173_v29 = vld [vmem:[%s2776_s3 + $0x60] sm:$0xff]   ;;  %vm1728_vm11 = vcmask 82944   ;;  %s2257_s15 = smov [#allocation4]  }
  0x48   :  { %1991 = vmatprep.subr.bf16.mxu1 %v2167_v22  ;;  %v2172_v27 = vld [vmem:[%s2776_s3 + $0x18] sm:$0xff]   ;;  %v2174_v30 = vld [vmem:[%s2776_s3 + $0x20] sm:$0xff]   ;;  %v2175_v31 = vld [vmem:[%s2776_s3 + $0x68] sm:$0xff]   ;;  %s1746_s16 = sshll.u32 %s2257_s15, 4  ;;  %s1747_s16 = int_to_ptr.vmem [resolvable:$true] %s1746_s16 }
  0x49   :  { %v2176_v32 = vld [vmem:[%s2776_s3 + $0x28] sm:$0xff]   ;;  %v2177_v33 = vld [vmem:[%s2776_s3 + $0x70] sm:$0xff]   ;;  %v2179_v35 = vld [vmem:[%s2776_s3 + $0x78] sm:$0xff]   ;;  %p2234_p1 = scmp.lt.s32.totalorder %s1747_s16, %s1747_s16 }
  0x4a   :  { %v2178_v34 = vld [vmem:[%s2776_s3 + $0x30] sm:$0xff]   ;;  %v2180_v36 = vld [vmem:[%s2776_s3 + $0x38] sm:$0xff]   ;;  %v773_v37 = vld [vmem:[%s2778_s5] sm:$0xff] }
  0x4b   :  { %1992 = vmatpush3.bf16.msra.mxu1 %v2168_v23  ;;  %2082 = vmatprep.mubr.msk.f32.mxu0 %vm775_vm0, %v773_v37  ;;  %v863_v38 = vld [vmem:[%s2774_s1] sm:$0xff]  ;;  %v2187_v44 = vld [vmem:[%s2776_s3 + $0x148] sm:$0xff]   ;;  %v2191_v46 = vld [vmem:[%s2776_s3 + $0x150] sm:$0xff]  }
  0x4c   :  { %1993 = vmatprep.subr.bf16.mxu1 %v2169_v24  ;;  %v867_v39 = vld [vmem:[%s2774_s1 + $0x20] sm:$0xff]  ;;  %v2188_v45 = vld [vmem:[%s2776_s3 + $0x108] sm:$0xff]   ;;  %v2192_v47 = vld [vmem:[%s2776_s3 + $0x110] sm:$0xff]  }
  0x4d   :  { %v2183_v40 = vld [vmem:[%s2776_s3 + $0x140] sm:$0xff]   ;;  %v1822_v41 = vcombine.low %v863_v38, %v867_v39  ;;  %v1823_v42 = vcombine.high %v863_v38, %v867_v39  ;;  %v2195_v48 = vld [vmem:[%s2776_s3 + $0x158] sm:$0xff]   ;;  %v2203_v52 = vld [vmem:[%s2776_s3 + $0x168] sm:$0xff]  }
  0x4e   :  { %v2184_v43 = vld [vmem:[%s2776_s3 + $0x100] sm:$0xff]   ;;  %v2196_v49 = vld [vmem:[%s2776_s3 + $0x118] sm:$0xff]   ;;  %v2204_v53 = vld [vmem:[%s2776_s3 + $0x128] sm:$0xff]  }
  0x4f   :  { %1994 = vmatpush3.bf16.msra.mxu1 %v2170_v25  ;;  %1457 = vmatprep.mubr.bf16.mxu1 %v1823_v42  ;;  %v2199_v50 = vld [vmem:[%s2776_s3 + $0x160] sm:$0xff]   ;;  %v2207_v54 = vld [vmem:[%s2776_s3 + $0x170] sm:$0xff]   ;;  %v2211_v56 = vld [vmem:[%s2776_s3 + $0x178] sm:$0xff]  }
  0x50   :  { %1995 = vmatprep.subr.bf16.mxu1 %v2171_v26  ;;  %v2200_v51 = vld [vmem:[%s2776_s3 + $0x120] sm:$0xff]   ;;  %v2208_v55 = vld [vmem:[%s2776_s3 + $0x130] sm:$0xff]   ;;  %v2212_v57 = vld [vmem:[%s2776_s3 + $0x138] sm:$0xff]  }
  0x51   :  { %v865_v58 = vld [vmem:[%s2774_s1 + $0x10] sm:$0xff]  ;;  %v1754_v63 = vld [vmem:[%s2777_s4] ss:$0 sm:$0xff]  ;;  %v864_v21 = vld [vmem:[%s2774_s1 + $0x8] sm:$0xff]  ;;  %s2229_s4 = scalar_lea.vmem %s1747_s16, 32 }
  0x52   :  { %v869_v59 = vld [vmem:[%s2774_s1 + $0x30] sm:$0xff]  ;;  %v868_v22 = vld [vmem:[%s2774_s1 + $0x28] sm:$0xff]  ;;  %v2181_v25 = vld [vmem:[%s2776_s3 + $0xc0] sm:$0xff]   ;;  %p2230_p0 = scmp.ne.s32.totalorder %s1747_s16, %s2229_s4  ;;  %p2235_p2 = scmp.lt.s32.totalorder %s2229_s4, %s2229_s4 }
  0x53   :  { %1996 = vmatpush3.bf16.msra.mxu1 %v2172_v27  ;;  %v1826_v60 = vcombine.low %v865_v58, %v869_v59  ;;  %v1827_v61 = vcombine.high %v865_v58, %v869_v59  ;;  %v774_v26 = vld [vmem:[%s2778_s5 + $0x8] sm:$0xff]  ;;  %v2182_v27 = vld [vmem:[%s2776_s3 + $0x80] sm:$0xff]   ;;  %v2209_v42 = vld [vmem:[%s2776_s3 + $0xf8] sm:$0xff]  }
  0x54   :  { %1997 = vmatprep.subr.bf16.mxu1 %v2173_v29  ;;  %v1825_v29 = vcombine.high %v864_v21, %v868_v22  ;;  %v2198_v37 = vld [vmem:[%s2776_s3 + $0xa0] sm:$0xff]   ;;  %v2201_v38 = vld [vmem:[%s2776_s3 + $0xe8] sm:$0xff]   ;;  %p2236_p3 = por %p2235_p2, %p2234_p1 }
  0x55   :  { %v2202_v39 = vld [vmem:[%s2776_s3 + $0xa8] sm:$0xff]  }
  0x56   :  { %v2223_v58 = vld [vmem:[%s2776_s3 + $0x1e8] sm:$0xff]   ;;  %p2237_p4 = pnand %p2236_p3, %p2230_p0 }
  0x57   :  { %1998 = vmatpush3.bf16.msra.mxu1 %v2174_v30  ;;  %v2185_v30 = vld [vmem:[%s2776_s3 + $0xc8] sm:$0xff]  }
  0x58   :  { %1999 = vmatprep.subr.bf16.mxu1 %v2175_v31  ;;  %v2186_v31 = vld [vmem:[%s2776_s3 + $0x88] sm:$0xff]  }
  0x59   :  { %v2224_v59 = vld [vmem:[%s2776_s3 + $0x1a8] sm:$0xff]  }
  0x5b   :  { %2000 = vmatpush3.bf16.msra.mxu1 %v2176_v32  ;;  %v2189_v32 = vld [vmem:[%s2776_s3 + $0xd0] sm:$0xff]  }
  0x5c   :  { %2001 = vmatprep.subr.bf16.mxu1 %v2177_v33  ;;  %v2190_v33 = vld [vmem:[%s2776_s3 + $0x90] sm:$0xff]  }
  0x5f   :  { %2002 = vmatpush3.bf16.msra.mxu1 %v2178_v34  ;;  %v2193_v34 = vld [vmem:[%s2776_s3 + $0xd8] sm:$0xff]  }
  0x60   :  { %2003 = vmatprep.subr.bf16.mxu1 %v2179_v35  ;;  %v2194_v35 = vld [vmem:[%s2776_s3 + $0x98] sm:$0xff]  }
  0x63   :  { %2004 = vmatpush3.bf16.msra.mxu1 %v2180_v36  ;;  %v2197_v36 = vld [vmem:[%s2776_s3 + $0xe0] sm:$0xff]  }
  0x64   :  { %2033 = vmatprep.subr.bf16.mxu1 %v2183_v40  ;;  %v2205_v40 = vld [vmem:[%s2776_s3 + $0xf0] sm:$0xff]  }
  0x66   :  { %1458 = vmatmul.mubr.bf16.vlgmr.msra.gmra.mrb[8].mxu1 %v1822_v41  ;;  %v2206_v41 = vld [vmem:[%s2776_s3 + $0xb0] sm:$0xff]  }
  0x67   :  { %2034 = vmatpush3.bf16.msra.mxu1 %v2184_v43  ;;  %1539 = vmatprep.mubr.bf16.mxu1 %v1827_v61  ;;  %v2210_v43 = vld [vmem:[%s2776_s3 + $0xb8] sm:$0xff]   ;;  %v2226_v61 = vld [vmem:[%s2776_s3 + $0x1b0] sm:$0xff]  }
  0x68   :  { %2035 = vmatprep.subr.bf16.mxu1 %v2187_v44  ;;  %v2213_v44 = vld [vmem:[%s2776_s3 + $0x1c0] sm:$0xff]  }
  0x6b   :  { %2036 = vmatpush3.bf16.msra.mxu1 %v2188_v45  ;;  %v866_v45 = vld [vmem:[%s2774_s1 + $0x18] sm:$0xff] }
  0x6c   :  { %2037 = vmatprep.subr.bf16.mxu1 %v2191_v46  ;;  %v870_v46 = vld [vmem:[%s2774_s1 + $0x38] sm:$0xff] }
  0x6f   :  { %2038 = vmatpush3.bf16.msra.mxu1 %v2192_v47  ;;  %v1824_v47 = vcombine.low %v864_v21, %v868_v22 }
  0x70   :  { %2039 = vmatprep.subr.bf16.mxu1 %v2195_v48  ;;  %v2214_v48 = vld [vmem:[%s2776_s3 + $0x180] sm:$0xff]  }
  0x73   :  { %2040 = vmatpush3.bf16.msra.mxu1 %v2196_v49  ;;  %v1829_v49 = vcombine.high %v866_v45, %v870_v46 }
  0x74   :  { %2041 = vmatprep.subr.bf16.mxu1 %v2199_v50  ;;  %v2215_v50 = vld [vmem:[%s2776_s3 + $0x1c8] sm:$0xff]  }
  0x77   :  { %2042 = vmatpush3.bf16.msra.mxu1 %v2200_v51  ;;  %v2216_v51 = vld [vmem:[%s2776_s3 + $0x188] sm:$0xff]  }
  0x78   :  { %2043 = vmatprep.subr.bf16.mxu1 %v2203_v52  ;;  %v2217_v52 = vld [vmem:[%s2776_s3 + $0x1d0] sm:$0xff]  }
  0x7b   :  { %2044 = vmatpush3.bf16.msra.mxu1 %v2204_v53  ;;  %v2218_v53 = vld [vmem:[%s2776_s3 + $0x190] sm:$0xff]  }
  0x7c   :  { %2045 = vmatprep.subr.bf16.mxu1 %v2207_v54  ;;  %v2219_v54 = vld [vmem:[%s2776_s3 + $0x1d8] sm:$0xff]  }
  0x7f   :  { %2046 = vmatpush3.bf16.msra.mxu1 %v2208_v55  ;;  %v2220_v55 = vld [vmem:[%s2776_s3 + $0x198] sm:$0xff]  }
  0x80   :  { %2047 = vmatprep.subr.bf16.mxu1 %v2211_v56  ;;  %v2221_v56 = vld [vmem:[%s2776_s3 + $0x1e0] sm:$0xff]  }
  0x83   :  { %2048 = vmatpush3.bf16.msra.mxu1 %v2212_v57  ;;  %v2222_v57 = vld [vmem:[%s2776_s3 + $0x1a0] sm:$0xff]  }
  0x86   :  { %1540 = vmatmul.mubr.bf16.vlgmr.msra.gmra.mrb[12].mxu1 %v1826_v60  ;;  %v2225_v60 = vld [vmem:[%s2776_s3 + $0x1f0] sm:$0xff]  }
  0xf6   :  { %v1914_v62 = vpop.f32.mrb[0].mxu0 }
  0xf7   :  { %v1915_v0 = vpop.f32.mrb[1].mxu0  ;;  %v1936_v1 = vpop.f32.mrb[0].mxu1 }
  0xf8   :  { %v1916_v2 = vadd.f32 %v1915_v0, %v1914_v62  ;;  %v1917_v3 = vpop.f32.mrb[2].mxu0  ;;  %v1937_v4 = vpop.f32.mrb[1].mxu1  ;;  %v2227_v62 = vld [vmem:[%s2776_s3 + $0x1f8] sm:$0xff]   ;;  %v1828_v0 = vcombine.low %v866_v45, %v870_v46 }
  0xf9   :  { %v1918_v5 = vpop.f32.mrb[3].mxu0  ;;  %v1938_v7 = vadd.f32 %v1937_v4, %v1936_v1  ;;  %v1939_v8 = vpop.f32.mrb[2].mxu1 }
  0xfa   :  { %v648_v6 = vadd.f32 %v1916_v2, %v1754_v63  ;;  %v1940_v9 = vpop.f32.mrb[3].mxu1  ;;  %v2228_v63 = vld [vmem:[%s2776_s3 + $0x1b8] sm:$0xff]  }
  0xfc   :  { %v688_v10 = vadd.f32 %v1938_v7, %v648_v6 }
 0x116   :  { %v1958_v11 = vpop.f32.mrb[4].mxu0 }
 0x117   :  { %v1959_v12 = vpop.f32.mrb[5].mxu0  ;;  %v1980_v13 = vpop.f32.mrb[4].mxu1 }
 0x118   :  { %v1960_v14 = vadd.f32 %v1959_v12, %v1958_v11  ;;  %v1961_v15 = vpop.f32.mrb[6].mxu0  ;;  %v1981_v16 = vpop.f32.mrb[5].mxu1 }
 0x119   :  { %v1962_v17 = vpop.f32.mrb[7].mxu0  ;;  %v1982_v19 = vadd.f32 %v1981_v16, %v1980_v13  ;;  %v1983_v20 = vpop.f32.mrb[6].mxu1 }
 0x11a   :  { %v728_v18 = vadd.f32 %v1960_v14, %v688_v10  ;;  %v1984_v23 = vpop.f32.mrb[7].mxu1 }
 0x11c   :  { %v768_v24 = vadd.f32 %v1982_v19, %v728_v18 }
 0x11e   :  { %2080 = vmatprep.subr.msk.mxu0 %vm782_vm1, %v768_v24 }
 0x11f   :  { %2081 = vmatpush3.msk.msra.mxu0 %vm782_vm1, %v768_v24 }
 0x120   :  { %2011 = vmatprep.subr.bf16.mxu0 %v2181_v25  ;;  %2083 = vmatmul.mubr.msk.f32.vlgmr.msra.gmra.mrb[8].mxu0 %vm775_vm0, %v774_v26 }
 0x121   :  { %2012 = vmatpush3.bf16.msra.mxu0 %v2182_v27  ;;  %1498 = vmatprep.mubr.bf16.mxu0 %v1825_v29 }
 0x122   :  { %2013 = vmatprep.subr.bf16.mxu0 %v2185_v30 }
 0x125   :  { %2014 = vmatpush3.bf16.msra.mxu0 %v2186_v31 }
 0x126   :  { %2015 = vmatprep.subr.bf16.mxu0 %v2189_v32 }
 0x129   :  { %2016 = vmatpush3.bf16.msra.mxu0 %v2190_v33 }
 0x12a   :  { %2017 = vmatprep.subr.bf16.mxu0 %v2193_v34 }
 0x12d   :  { %2018 = vmatpush3.bf16.msra.mxu0 %v2194_v35  ;;  %v1589_v35 = vld [vmem:[%s2775_s2] sm:$0xff] }
 0x12e   :  { %2019 = vmatprep.subr.bf16.mxu0 %v2197_v36 }
 0x131   :  { %2020 = vmatpush3.bf16.msra.mxu0 %v2198_v37 }
 0x132   :  { %2021 = vmatprep.subr.bf16.mxu0 %v2201_v38  ;;  %v1590_v38 = vld [vmem:[%s2775_s2 + $0x8] sm:$0xff] }
 0x135   :  { %2022 = vmatpush3.bf16.msra.mxu0 %v2202_v39 }
 0x136   :  { %2023 = vmatprep.subr.bf16.mxu0 %v2205_v40 }
 0x139   :  { %2024 = vmatpush3.bf16.msra.mxu0 %v2206_v41  ;;  %v2005_v1 = vpop.f32.mrb[8].mxu1 }
 0x13a   :  { %2025 = vmatprep.subr.bf16.mxu0 %v2209_v42  ;;  %v2006_v2 = vpop.f32.mrb[9].mxu1 }
 0x13b   :  { %v2008_v3 = vpop.f32.mrb[10].mxu1  ;;  %v2007_v4 = vadd.f32 %v2006_v2, %v2005_v1 }
 0x13c   :  { %v2009_v5 = vpop.f32.mrb[11].mxu1 }
 0x13d   :  { %2026 = vmatpush3.bf16.msra.mxu0 %v2210_v43  ;;  %v2010_v6 = vadd.f32 %v2009_v5, %v2008_v3 }
 0x13e   :  { %2055 = vmatprep.subr.bf16.mxu0 %v2213_v44  ;;  %v2745_v44 = vand.u32 127, %v176_v28  ;;  %v2254_v28 = vmov 0.0  }
 0x13f   :  { %33 = vst.msk [vmem:[#allocation3] sm:$0xff] %vm32_vm2, %v2254_v28  ;;  %34 = vst.msk [vmem:[#allocation3 + $0x8] sm:$0xff] %vm32_vm2, %v2254_v28  ;;  %2089 = vmatprep.mubr.msk.f32.mxu1 %vm2256_vm7, %v2254_v28 }
 0x140   :  { %1499 = vmatmul.mubr.bf16.vlgmr.msra.gmra.mrb[12].mxu0 %v1824_v47  ;;  %vm1733_vm12 = vcmp.eq.s32.totalorder %v2745_v44, 10 }
 0x141   :  { %2056 = vmatpush3.bf16.msra.mxu0 %v2214_v48  ;;  %1580 = vmatprep.mubr.bf16.mxu0 %v1829_v49 }
 0x142   :  { %2057 = vmatprep.subr.bf16.mxu0 %v2215_v50 }
 0x145   :  { %2058 = vmatpush3.bf16.msra.mxu0 %v2216_v51 }
 0x146   :  { %2059 = vmatprep.subr.bf16.mxu0 %v2217_v52 }
 0x149   :  { %2060 = vmatpush3.bf16.msra.mxu0 %v2218_v53 }
 0x14a   :  { %2061 = vmatprep.subr.bf16.mxu0 %v2219_v54 }
 0x14d   :  { %2062 = vmatpush3.bf16.msra.mxu0 %v2220_v55 }
 0x14e   :  { %2063 = vmatprep.subr.bf16.mxu0 %v2221_v56 }
 0x151   :  { %2064 = vmatpush3.bf16.msra.mxu0 %v2222_v57 }
 0x152   :  { %2065 = vmatprep.subr.bf16.mxu0 %v2223_v58 }
 0x155   :  { %2066 = vmatpush3.bf16.msra.mxu0 %v2224_v59 }
 0x156   :  { %2067 = vmatprep.subr.bf16.mxu0 %v2225_v60 }
 0x159   :  { %2068 = vmatpush3.bf16.msra.mxu0 %v2226_v61  ;;  %v2049_v7 = vpop.f32.mrb[12].mxu1 }
 0x15a   :  { %2069 = vmatprep.subr.bf16.mxu0 %v2227_v62  ;;  %v2050_v8 = vpop.f32.mrb[13].mxu1 }
 0x15b   :  { %v2051_v9 = vadd.f32 %v2050_v8, %v2049_v7  ;;  %v2052_v10 = vpop.f32.mrb[14].mxu1 }
 0x15c   :  { %v2053_v11 = vpop.f32.mrb[15].mxu1 }
 0x15d   :  { %2070 = vmatpush3.bf16.msra.mxu0 %v2228_v63  ;;  %v2054_v12 = vadd.f32 %v2053_v11, %v2052_v10  ;;  %v2255_v63 = vmov 0.0|0.0  }
 0x15e   :  { %2092 = vmatprep.subr.bf16.mxu1 %v2255_v63 }
 0x160   :  { %1581 = vmatmul.mubr.bf16.vlgmr.msra.gmra.mrb[16].mxu0 %v1828_v0 }
 0x1f3   :  { %v2084_v13 = vpop.f32.mrb[8].mxu0 }
 0x1f4   :  { %862 = vst.msk [vmem:[#allocation2 + $0x8] sm:$0xff] %vm32_vm2, %v2084_v13  ;;  %v852_v14 = vpop.f32.mrb[9].mxu0  ;;  %v1637_v13 = vld [vmem:[#allocation3 + $0x8] sm:$0xff] }
 0x1f5   :  { %861 = vst.msk [vmem:[#allocation2] sm:$0xff] %vm32_vm2, %v852_v14 }
 0x1fb   :  { %v1000_v17 = vld [vmem:[#allocation2 + $0x8] sm:$0xff] }
 0x1fc   :  { %v999_v15 = vld [vmem:[#allocation2] sm:$0xff]  ;;  %v1463_v23 = vadd.f32 %v2010_v6, %v1000_v17  ;;  %v1636_v6 = vld [vmem:[#allocation3] sm:$0xff] }
 0x1fd   :  { %v1460_v19 = vadd.f32 %v2007_v4, %v999_v15 }
 0x213   :  { %v2027_v16 = vpop.f32.mrb[12].mxu0 }
 0x214   :  { %v2028_v18 = vpop.f32.mrb[13].mxu0 }
 0x215   :  { %v2029_v20 = vadd.f32 %v2028_v18, %v2027_v16  ;;  %v2030_v21 = vpop.f32.mrb[14].mxu0 }
 0x216   :  { %v2031_v22 = vpop.f32.mrb[15].mxu0 }
 0x217   :  { %v1501_v24 = vadd.f32 %v2029_v20, %v1460_v19  ;;  %v2032_v25 = vadd.f32 %v2031_v22, %v2030_v21  ;;  %v1651_v19 = vld [vmem:[%s2779_s6] sm:$0x3] }
 0x219   :  { %v1504_v26 = vadd.f32 %v2032_v25, %v1463_v23  ;;  %v1542_v27 = vadd.f32 %v2051_v9, %v1501_v24  ;;  %v1897_v23 = vsel %vm1733_vm12, 1.0, %v2254_v28 }
 0x21b   :  { %v1545_v29 = vadd.f32 %v2054_v12, %v1504_v26 }
 0x233   :  { %v2071_v30 = vpop.f32.mrb[16].mxu0 }
 0x234   :  { %v2072_v31 = vpop.f32.mrb[17].mxu0 }
 0x235   :  { %v2073_v32 = vadd.f32 %v2072_v31, %v2071_v30  ;;  %v2074_v33 = vpop.f32.mrb[18].mxu0 }
 0x236   :  { %v2075_v34 = vpop.f32.mrb[19].mxu0 }
 0x237   :  { %v1583_v36 = vadd.f32 %v2073_v32, %v1542_v27  ;;  %v2076_v37 = vadd.f32 %v2075_v34, %v2074_v33 }
 0x239   :  { %v1586_v39 = vadd.f32 %v2076_v37, %v1545_v29  ;;  %v1591_v40 = vadd.f32 %v1589_v35, %v1583_v36 }
 0x23b   :  { %v1596_v41 = vsel %vm32_vm2, %v1591_v40, -inf  ;;  %v1592_v42 = vadd.f32 %v1590_v38, %v1586_v39 }
 0x23c   :  { %1597 = vmax.xlane.f32.xlu0 %v1596_v41 }
 0x23d   :  { %v1599_v43 = vsel %vm32_vm2, %v1592_v42, -inf }
 0x240   :  { %1600 = vmax.xlane.f32.xlu0 %v1599_v43 }
 0x2c9   :  { %v1598_v45 = vpop.xlane.xlu0 %1597 }
 0x2ca   :  { %vm1602_vm3 = vcmp.ge.f32.partialorder %v1591_v40, %v1598_v45 }
 0x2cb   :  { %v1604_v46 = vsel %vm1602_vm3, %v2745_v44, 11 }
 0x2cc   :  { %v1606_v47 = vsel %vm32_vm2, %v1604_v46, 2147483647 }
 0x2cd   :  { %v1601_v48 = vpop.xlane.xlu0 %1600  ;;  %v1608_v49 = vshra.s32 %v1606_v47, 16  ;;  %v1607_v55 = vand.u32 65535, %v1606_v47 }
 0x2ce   :  { %vm1603_vm4 = vcmp.ge.f32.partialorder %v1592_v42, %v1601_v48 }
 0x2cf   :  { %v1605_v50 = vsel %vm1603_vm4, %v2745_v44, 11  ;;  %v1610_v51 = vcvt.s32.f32 %v1608_v49  ;;  %v1609_v57 = vcvt.s32.f32 %v1607_v55 }
 0x2d0   :  { %v1621_v52 = vsel %vm32_vm2, %v1605_v50, 2147483647 }
 0x2d1   :  { %1611 = vmin.xlane.f32.xlu1 %v1610_v51  ;;  %v1623_v53 = vshra.s32 %v1621_v52, 16  ;;  %v1622_v58 = vand.u32 65535, %v1621_v52 }
 0x2d3   :  { %v1625_v54 = vcvt.s32.f32 %v1623_v53  ;;  %v1624_v61 = vcvt.s32.f32 %v1622_v58 }
 0x2d5   :  { %1626 = vmin.xlane.f32.xlu1 %v1625_v54 }
 0x35e   :  { %v1612_v56 = vpop.xlane.xlu1 %1611 }
 0x35f   :  { %vm1613_vm5 = vcmp.eq.f32.partialorder %v1610_v51, %v1612_v56  ;;  %v1618_v0 = vcvt.f32.s32 %v1612_v56 }
 0x360   :  { %v1614_v59 = vsel %vm1613_vm5, %v1609_v57, inf }
 0x361   :  { %1615 = vmin.xlane.f32.xlu0 %v1614_v59  ;;  %v1619_v2 = vshll.u32 %v1618_v0, 16 }
 0x362   :  { %v1627_v60 = vpop.xlane.xlu1 %1626 }
 0x363   :  { %vm1628_vm6 = vcmp.eq.f32.partialorder %v1625_v54, %v1627_v60  ;;  %v1633_v3 = vcvt.f32.s32 %v1627_v60 }
 0x364   :  { %v1629_v62 = vsel %vm1628_vm6, %v1624_v61, inf }
 0x365   :  { %1630 = vmin.xlane.f32.xlu1 %v1629_v62  ;;  %v1634_v8 = vshll.u32 %v1633_v3, 16 }
 0x3ee   :  { %v1616_v1 = vpop.xlane.xlu0 %1615 }
 0x3ef   :  { %v1617_v4 = vcvt.f32.s32 %v1616_v1 }
 0x3f1   :  { %v1620_v5 = vadd.s32 %v1619_v2, %v1617_v4 }
 0x3f2   :  { %v1631_v7 = vpop.xlane.xlu1 %1630 }
 0x3f3   :  { %vm1638_vm8 = vcmp.eq.s32.totalorder %v2745_v44, %v1620_v5  ;;  %v1632_v9 = vcvt.f32.s32 %v1631_v7 }
 0x3f4   :  { %v1894_v10 = vsel %vm1638_vm8, 1.0, %v2254_v28 }
 0x3f5   :  { %v1644_v11 = vadd.f32 %v1894_v10, %v1636_v6  ;;  %v1635_v12 = vadd.s32 %v1634_v8, %v1632_v9 }
 0x3f7   :  { %1646 = vst.msk [vmem:[#allocation3] sm:$0xff] %vm32_vm2, %v1644_v11  ;;  %vm1639_vm9 = vcmp.eq.s32.totalorder %v2745_v44, %v1635_v12 }
 0x3f8   :  { %v1895_v14 = vsel %vm1639_vm9, 1.0, %v2254_v28 }
 0x3f9   :  { %v1645_v15 = vadd.f32 %v1895_v14, %v1637_v13 }
 0x3fb   :  { %1647 = vst.msk [vmem:[#allocation3 + $0x8] sm:$0xff] %vm32_vm2, %v1645_v15 }
 0x3fe   :  { %v1652_v16 = vld [vmem:[#allocation3] sm:$0xff] }
 0x402   :  { %v1653_v17 = vld [vmem:[#allocation3 + $0x8] sm:$0xff] }
 0x403   :  { %v2093_v18 = vpack.c.bf16 %v1653_v17, %v1652_v16 }
 0x405   :  { %2094 = vmatpush3.bf16.msra.mxu1 %v2093_v18 }
 0x408   :  { %2090 = vmatmul.mubr.msk.f32.vlgmr.msra.gmra.mrb[16].mxu1 %vm1654_vm10, %v1651_v19 }
 0x4db   :  { %v1724_v20 = vpop.f32.mrb[16].mxu1 }
 0x4dc   :  { %v1729_v21 = vsel %vm1728_vm11, %v1724_v20, -inf  ;;  %v2091_v22 = vpop.f32.mrb[17].mxu1 }
 0x4dd   :  { %1730 = vmax.xlane.f32.xlu0 %v1729_v21 }
 0x56a   :  { %v1731_v24 = vpop.xlane.xlu0 %1730 }
 0x56b   :  { %vm1732_vm13 = vcmp.ge.f32.partialorder %v1731_v24, 4.0 }
 0x56c   :  { %v1738_v25 = vsel %vm1732_vm13, %v1724_v20, %v1897_v23 }
 0x56d   :  { %1739 = vst.msk [vmem:[#allocation4] sm:$0x3] %vm1728_vm11, %v1738_v25 }
 0x56e   :  { %2240 = shalt.err (!%p2237_p4)
}
 0x56f   :  { %s2241_s18 = scalar_lea.hbm %s2780_s7, 32 }
 0x570   :  { %p2242_p5 = scmp.ne.s32.totalorder %s2780_s7, %s2241_s18  ;;  %p2245_p6 = scmp.lt.u32.totalorder %s2241_s18, %s2780_s7 }
 0x572   :  { %p2247_p7 = pnand %p2245_p6, %p2242_p5 }
 0x574   :  { %2250 = shalt.err (!%p2247_p7)
}
 0x575   :  { %1749 = dma.vmem_to_hbm [thread:$0]  %s1747_s16, 32, %s2780_s7, [#allocation5]  }
 0x576   :  { %2251 = dma.done.wait [#allocation5], 32  }
 0x577   :  { %2252 = vsyncadd [#allocation5], 4294967264 }
 0x578   :  { %1753 = vsyncpa [#allocation5], 1 }

</bundles_post_ra>
